<compile_context>
chip_gen: v7x
topology: tpu7x:2x2x1
jax: 0.10.0
libtpu: 0.0.40
codegen_flags: <defaults>
</compile_context>

<pallas_src>
import functools

import jax
import jax.numpy as jnp
from jax import lax
from jax.experimental import pallas as pl
from jax.experimental.pallas import tpu as pltpu


def attention_concat_kernel(dec_ref, enc_ref, wad_ref, wae_ref, va_ref, out_ref,
                            *, compute_dtype, tanh_dtype, approx_recip):
    # dec_ref : (TB, Ddec)    last-layer decoder hidden, batch tile (native dtype)
    # enc_ref : (TB, S, E)    encoder outputs, batch tile (native dtype)
    # wad_ref : (Ddec, Ddec)  Wa_concat columns multiplying the decoder part (out, in)
    # wae_ref : (Ddec, E)     Wa_concat columns multiplying the encoder part (out, in)
    # va_ref  : (1, Ddec)     Va weight (out, in)
    # out_ref : (TB, S)       attention weights (softmax over S)
    tb, s, e = enc_ref.shape
    d = wad_ref.shape[0]

    # x @ W.T : contract the 'in' axes of the PyTorch-layout (out, in) weights.
    dn = (((1,), (1,)), ((), ()))

    dec = dec_ref[...].astype(compute_dtype)
    wad = wad_ref[...].astype(compute_dtype)
    wae = wae_ref[...].astype(compute_dtype)
    va = va_ref[...].astype(jnp.float32)

    # (TB, Ddec) @ Wa_dec.T -> (TB, Ddec); f32 accumulation on the MXU.
    dec_proj = lax.dot_general(dec, wad, dn, preferred_element_type=jnp.float32)

    # Flatten leading (TB, S) dims so the MXU sees M = TB*S.  Do the reshape in
    # whichever dtype keeps the sublane merge a free relayout (packing: 8 rows
    # for 4-byte input, 16 for 2-byte); the cast itself is elementwise (VPU).
    enc = enc_ref[...]
    in_pack = (32 // (enc.dtype.itemsize * 8)) * 8      # 8 for f32, 16 for bf16
    if s % in_pack == 0:
        enc2 = enc.reshape(tb * s, e).astype(compute_dtype)
    else:
        # Ragged S: the sublane merge may materialize a VMEM copy (perf only).
        enc2 = enc.astype(compute_dtype).reshape(tb * s, e)
    enc_proj = lax.dot_general(enc2, wae, dn,
                               preferred_element_type=jnp.float32)      # (TB*S, Ddec)

    # tanh(Wa_concat([dec_rep | enc])) == tanh(dec@Wa_dec.T + enc@Wa_enc.T).
    # Add in f32; tanh in tanh_dtype (bf16 on v7x EUP, f32 elsewhere).
    pre = enc_proj.reshape(tb, s, d) + dec_proj[:, None, :]             # (TB, S, Ddec)
    h = jnp.tanh(pre.astype(tanh_dtype)).astype(jnp.float32)

    # Va projection as VPU multiply + lane (XLU) reduce; keeps N=1 off the MXU.
    scores = jnp.sum(h * va, axis=-1)                                   # (TB, S) f32

    # Softmax along the sequence axis, in f32.
    m = jnp.max(scores, axis=-1, keepdims=True)
    p = jnp.exp(scores - m)
    denom = jnp.sum(p, axis=-1, keepdims=True)
    if approx_recip:
        w = p * pl.reciprocal(denom, approx=True)   # EUP slot: effectively free
    else:
        w = p / denom                               # exact path (verification)
    out_ref[...] = w.astype(out_ref.dtype)


def _device_info():
    """Returns (VMEM bytes per TensorCore, TensorCores per chip, prefer bf16 tanh)."""
    kind = ""
    try:
        kind = jax.devices()[0].device_kind.lower()
    except Exception:
        pass
    if "v7" in kind:
        return 64 << 20, 2, True       # v7x: 64 MiB VMEM/TC, 2 TCs, bf16 EUP priority
    if "v6" in kind:
        return 128 << 20, 1, False     # v6e: bf16 tanh only if EUP profiles as binding
    if "v5p" in kind or "v4" in kind:
        return 128 << 20, 2, False     # megacore chips
    if "v5" in kind:
        return 128 << 20, 1, False     # v5e: no bf16 EUP -> keep f32 tanh
    return 64 << 20, 1, False          # unknown chip: conservative defaults


def _pick_block_b(B, S, E, D, enc_bytes, dec_bytes, w_bytes, vmem_bytes, num_tc):
    """VMEM-budget-driven batch tile (plus per-row / weight byte accounting)."""
    # Bytes of VMEM one batch row costs per grid step: double-buffered enc/dec
    # tiles, the f32 intermediates (enc_proj, h, scores/p) and the out tile.
    per_row = (2 * S * E * enc_bytes          # enc tile (double-buffered)
               + 2 * S * D * 4                # enc_proj + h (f32 intermediates)
               + 4 * S * 4                    # scores / p / out tile (f32)
               + 2 * D * dec_bytes)           # dec tile (double-buffered)
    weight_bytes = 2 * (D * (D + E) + D) * w_bytes    # worst case: double-buffered
    budget = int(vmem_bytes * 0.6) - weight_bytes
    bb = max(1, budget // max(per_row, 1))
    bb = min(bb, B)
    if num_tc > 1 and B > 1:
        # Keep >= num_tc grid steps so the "parallel" axis feeds every TensorCore.
        bb = min(bb, -(-B // num_tc))
    if bb < B:
        mult = 16 if bb >= 16 else 8          # 16: bf16 sublane packing; 8 min for f32
        bb = min(max(mult, (bb // mult) * mult), B)
    return int(bb), int(per_row), int(weight_bytes)


def attention_concat(decoder_hidden_state, encoder_output, Wa_weight, Va_weight, *,
                     compute_dtype=jnp.bfloat16, tanh_dtype=None, block_b=None):
    """
    decoder_hidden_state : [num_layer, B, Ddec]
    encoder_output       : [B, S, E]
    Wa_weight            : [Ddec, Ddec + E]   (PyTorch nn.Linear (out, in) layout)
    Va_weight            : [1, Ddec]
    returns              : [B, S] attention weights (float32)
    """
    B, S, E = encoder_output.shape
    Ddec = decoder_hidden_state.shape[-1]

    vmem_bytes, num_tc, prefer_bf16_tanh = _device_info()

    exact = jnp.dtype(compute_dtype) == jnp.dtype(jnp.float32)
    if tanh_dtype is None:
        tanh_dtype = jnp.bfloat16 if (prefer_bf16_tanh and not exact) else jnp.float32

    # Inputs/weights go to the kernel in their native dtype: no wrapper-side
    # cast pass over the dominant encoder stream (that would ~2x its HBM bytes);
    # the MXU-input cast happens in VMEM inside the kernel.
    dec_last = decoder_hidden_state[-1]            # (B, Ddec)
    wa_dec = Wa_weight[:, :Ddec]                   # (Ddec, Ddec)
    wa_enc = Wa_weight[:, Ddec:]                   # (Ddec, E)

    enc_bytes = jnp.dtype(encoder_output.dtype).itemsize
    dec_bytes = jnp.dtype(dec_last.dtype).itemsize
    w_bytes = jnp.dtype(Wa_weight.dtype).itemsize

    auto_bb, per_row, weight_bytes = _pick_block_b(
        B, S, E, Ddec, enc_bytes, dec_bytes, w_bytes, vmem_bytes, num_tc)
    if block_b is None:
        block_b = auto_bb
    block_b = max(1, min(int(block_b), B))
    grid = (pl.cdiv(B, block_b),)

    # Scoped-VMEM limit sized to the chosen tile (+ headroom), capped below the
    # detected chip's physical VMEM (64 MiB on v7x, 128 MiB on v5e/v6e).
    needed = weight_bytes + block_b * per_row + (2 << 20)
    vmem_limit = int(min(int(vmem_bytes * 0.9), max(32 << 20, int(needed * 1.5))))

    cost = pl.CostEstimate(
        flops=2 * B * S * E * Ddec + 2 * B * Ddec * Ddec + 2 * B * S * Ddec + 6 * B * S,
        transcendentals=B * S * Ddec + B * S,
        bytes_accessed=(B * S * E * enc_bytes + B * Ddec * dec_bytes
                        + (Ddec * (Ddec + E) + Ddec) * w_bytes + B * S * 4),
    )

    kernel = functools.partial(
        attention_concat_kernel,
        compute_dtype=compute_dtype,
        tanh_dtype=tanh_dtype,
        approx_recip=not exact,
    )

    def make_call(single_buffer_weights):
        def wspec(shape):
            # Grid-invariant weights (index_map always 0): single-buffer to save
            # half their VMEM -- matters most under v7x's 64 MiB.
            if single_buffer_weights:
                return pl.BlockSpec(shape, lambda b: (0,) * len(shape),
                                    pipeline_mode=pl.Buffered(1))
            return pl.BlockSpec(shape, lambda b: (0,) * len(shape))

        return pl.pallas_call(
            kernel,
            out_shape=jax.ShapeDtypeStruct((B, S), jnp.float32),
            grid=grid,
            in_specs=[
                pl.BlockSpec((block_b, Ddec), lambda b: (b, 0)),
                pl.BlockSpec((block_b, S, E), lambda b: (b, 0, 0)),
                wspec((Ddec, Ddec)),
                wspec((Ddec, E)),
                wspec((1, Ddec)),
            ],
            out_specs=pl.BlockSpec((block_b, S), lambda b: (b, 0)),
            compiler_params=pltpu.CompilerParams(
                dimension_semantics=("parallel",),
                vmem_limit_bytes=vmem_limit),
            cost_estimate=cost,
        )

    args = (dec_last, encoder_output, wa_dec, wa_enc, Va_weight)
    use_single_buffer = hasattr(pl, "Buffered")
    try:
        return make_call(use_single_buffer)(*args)
    except Exception:
        if not use_single_buffer:
            raise
        # Fallback for JAX versions without BlockSpec.pipeline_mode / Buffered(1)
        # support on this path: default double-buffered weights (same results,
        # slightly more VMEM).
        return make_call(False)(*args)


def reference_attention_concat(decoder_hidden_state, encoder_output, Wa_weight, Va_weight):
    """Pure-JAX f32 mirror of the PyTorch forward for verification."""
    dec_last = decoder_hidden_state[-1]                              # (B, Ddec)
    S = encoder_output.shape[1]
    dec_rep = jnp.repeat(dec_last[:, None, :], S, axis=1)            # (B, S, Ddec)
    cat = jnp.concatenate([dec_rep, encoder_output], axis=-1)        # (B, S, Ddec+E)
    att = jnp.squeeze(jnp.tanh(cat @ Wa_weight.T) @ Va_weight.T, -1) # (B, S)
    return jax.nn.softmax(att, axis=-1)


if __name__ == "__main__":
    # Small, deterministic example shapes consistent with the module.
    num_layer = 2
    batch = 2
    seq_len = 8
    enc_hidden = 32   # config.chatbot_encoder_hidden_size
    dec_hidden = 32   # config.chatbot_decoder_hidden_size

    key = jax.random.PRNGKey(0)
    k_dec, k_enc, k_wa, k_va = jax.random.split(key, 4)

    decoder_hidden_state = jax.random.normal(
        k_dec, (num_layer, batch, dec_hidden), dtype=jnp.float32)
    encoder_output = jax.random.normal(
        k_enc, (batch, seq_len, enc_hidden), dtype=jnp.float32)

    # Deterministic parameter init (uniform +/- 1/sqrt(fan_in), PyTorch-like).
    fan_in_wa = dec_hidden + enc_hidden
    Wa_weight = jax.random.uniform(
        k_wa, (dec_hidden, fan_in_wa), dtype=jnp.float32,
        minval=-1.0 / fan_in_wa ** 0.5, maxval=1.0 / fan_in_wa ** 0.5)
    Va_weight = jax.random.uniform(
        k_va, (1, dec_hidden), dtype=jnp.float32,
        minval=-1.0 / dec_hidden ** 0.5, maxval=1.0 / dec_hidden ** 0.5)

    ref = reference_attention_concat(
        decoder_hidden_state, encoder_output, Wa_weight, Va_weight)
    ref = jax.block_until_ready(ref)

    # Exactness check: full f32 compute path (exact division, f32 tanh).
    out_f32 = attention_concat(decoder_hidden_state, encoder_output,
                               Wa_weight, Va_weight,
                               compute_dtype=jnp.float32, tanh_dtype=jnp.float32)
    out_f32 = jax.block_until_ready(out_f32)
    assert out_f32.shape == (batch, seq_len)
    assert jnp.allclose(out_f32, ref, atol=1e-5, rtol=1e-5), "f32 mismatch vs reference"
    assert jnp.allclose(jnp.sum(out_f32, axis=-1), jnp.ones((batch,)), atol=1e-5)

    # Default fast path: bf16 MXU inputs (cast in-kernel), chip-dependent tanh
    # dtype, approximate softmax reciprocal -> looser tolerance.
    out = attention_concat(decoder_hidden_state, encoder_output, Wa_weight, Va_weight)
    out = jax.block_until_ready(out)
    assert out.shape == (batch, seq_len)
    assert jnp.allclose(out, ref, atol=2e-2, rtol=2e-2), "bf16 mismatch vs reference"
    # Rows of a softmax sum to ~1 (approx reciprocal allowed a small slack).
    assert jnp.allclose(jnp.sum(out, axis=-1), jnp.ones((batch,)), atol=1e-2)

    print("KERNEL_OK")
</pallas_src>

<mosaic_0001>
module attributes {stable_mosaic.version = 11 : i64} {
  func.func @attention_concat_kernel(%arg0: i32, %arg1: memref<2x32xf32, #tpu.memory_space<vmem>>, %arg2: memref<2x8x32xf32, #tpu.memory_space<vmem>>, %arg3: memref<32x32xf32, #tpu.memory_space<vmem>>, %arg4: memref<32x32xf32, #tpu.memory_space<vmem>>, %arg5: memref<1x32xf32, #tpu.memory_space<vmem>>, %arg6: memref<2x8xf32, #tpu.memory_space<vmem>>) attributes {dimension_semantics = [#tpu.dimension_semantics<parallel>], iteration_bounds = array<i64: 1>, scalar_prefetch = 0 : i64, scratch_operands = 0 : i64, tpu.core_type = #tpu.core_type<tc>, window_params = [{transform_indices = @transform_0, window_bounds = array<i64: 2, 32>}, {transform_indices = @transform_1, window_bounds = array<i64: 2, 8, 32>}, {pipeline_mode = #tpu.pipeline_mode<synchronous>, transform_indices = @transform_2, window_bounds = array<i64: 32, 32>}, {pipeline_mode = #tpu.pipeline_mode<synchronous>, transform_indices = @transform_3, window_bounds = array<i64: 32, 32>}, {pipeline_mode = #tpu.pipeline_mode<synchronous>, transform_indices = @transform_4, window_bounds = array<i64: 1, 32>}, {transform_indices = @transform_5, window_bounds = array<i64: 2, 8>}]} {
    %c0 = arith.constant 0 : index
    %c0_0 = arith.constant 0 : index
    %0 = vector.load %arg1[%c0, %c0_0] : memref<2x32xf32, #tpu.memory_space<vmem>>, vector<2x32xf32>
    %c0_1 = arith.constant 0 : index
    %c0_2 = arith.constant 0 : index
    %1 = vector.load %arg3[%c0_1, %c0_2] : memref<32x32xf32, #tpu.memory_space<vmem>>, vector<32x32xf32>
    %c0_3 = arith.constant 0 : index
    %c0_4 = arith.constant 0 : index
    %2 = vector.load %arg4[%c0_3, %c0_4] : memref<32x32xf32, #tpu.memory_space<vmem>>, vector<32x32xf32>
    %c0_5 = arith.constant 0 : index
    %c0_6 = arith.constant 0 : index
    %3 = vector.load %arg5[%c0_5, %c0_6] : memref<1x32xf32, #tpu.memory_space<vmem>>, vector<1x32xf32>
    %cst = arith.constant dense<0.000000e+00> : vector<2x32xf32>
    %4 = tpu.matmul %0, %1, %cst {dimension_numbers = #tpu.dot_dimension_numbers<[1], [1], [0], [0], [0, 0, 1, 0], [], []>} : vector<2x32xf32>, vector<32x32xf32>, vector<2x32xf32> -> vector<2x32xf32>
    %c0_7 = arith.constant 0 : index
    %c0_8 = arith.constant 0 : index
    %c0_9 = arith.constant 0 : index
    %5 = vector.load %arg2[%c0_7, %c0_8, %c0_9] : memref<2x8x32xf32, #tpu.memory_space<vmem>>, vector<2x8x32xf32>
    %6 = vector.shape_cast %5 : vector<2x8x32xf32> to vector<16x32xf32>
    %cst_10 = arith.constant dense<0.000000e+00> : vector<16x32xf32>
    %7 = tpu.matmul %6, %2, %cst_10 {dimension_numbers = #tpu.dot_dimension_numbers<[1], [1], [0], [0], [0, 0, 1, 0], [], []>} : vector<16x32xf32>, vector<32x32xf32>, vector<16x32xf32> -> vector<16x32xf32>
    %8 = vector.shape_cast %7 : vector<16x32xf32> to vector<2x8x32xf32>
    %9 = vector.shape_cast %4 : vector<2x32xf32> to vector<2x1x32xf32>
    %10 = vector.broadcast %9 : vector<2x1x32xf32> to vector<2x8x32xf32>
    %11 = arith.addf %8, %10 : vector<2x8x32xf32>
    %12 = math.tanh %11 : vector<2x8x32xf32>
    %13 = vector.shape_cast %3 : vector<1x32xf32> to vector<1x1x32xf32>
    %14 = vector.broadcast %13 : vector<1x1x32xf32> to vector<2x8x32xf32>
    %15 = arith.mulf %12, %14 : vector<2x8x32xf32>
    %cst_11 = arith.constant dense<0.000000e+00> : vector<2x8xf32>
    %16 = vector.multi_reduction <add>, %15, %cst_11 [2] : vector<2x8x32xf32> to vector<2x8xf32>
    %cst_12 = arith.constant dense<0xFF800000> : vector<2xf32>
    %17 = vector.multi_reduction <maximumf>, %16, %cst_12 [1] : vector<2x8xf32> to vector<2xf32>
    %18 = vector.shape_cast %17 : vector<2xf32> to vector<2x1xf32>
    %19 = vector.broadcast %18 : vector<2x1xf32> to vector<2x8xf32>
    %20 = arith.subf %16, %19 : vector<2x8xf32>
    %21 = math.exp %20 : vector<2x8xf32>
    %cst_13 = arith.constant dense<0.000000e+00> : vector<2xf32>
    %22 = vector.multi_reduction <add>, %21, %cst_13 [1] : vector<2x8xf32> to vector<2xf32>
    %23 = vector.shape_cast %22 : vector<2xf32> to vector<2x1xf32>
    %24 = vector.broadcast %23 : vector<2x1xf32> to vector<2x8xf32>
    %25 = arith.divf %21, %24 : vector<2x8xf32>
    %c0_14 = arith.constant 0 : index
    %c0_15 = arith.constant 0 : index
    %26 = vector.load %arg6[%c0_14, %c0_15] : memref<2x8xf32, #tpu.memory_space<vmem>>, vector<2x8xf32>
    tpu.vector_store %arg6[%c0_14, %c0_15], %25 {strides = array<i32>} : memref<2x8xf32, #tpu.memory_space<vmem>>, vector<2x8xf32>,
    return
  }
  func.func @transform_0(%arg0: i32) -> (i32, i32) {
    %c0_i32 = arith.constant 0 : i32
    %c0_i32_0 = arith.constant 0 : i32
    return %arg0, %c0_i32 : i32, i32
  }
  func.func @transform_1(%arg0: i32) -> (i32, i32, i32) {
    %c0_i32 = arith.constant 0 : i32
    %c0_i32_0 = arith.constant 0 : i32
    %c0_i32_1 = arith.constant 0 : i32
    return %arg0, %c0_i32, %c0_i32_0 : i32, i32, i32
  }
  func.func @transform_2(%arg0: i32) -> (i32, i32) {
    %c0_i32 = arith.constant 0 : i32
    %c0_i32_0 = arith.constant 0 : i32
    %c0_i32_1 = arith.constant 0 : i32
    return %c0_i32, %c0_i32_0 : i32, i32
  }
  func.func @transform_3(%arg0: i32) -> (i32, i32) {
    %c0_i32 = arith.constant 0 : i32
    %c0_i32_0 = arith.constant 0 : i32
    %c0_i32_1 = arith.constant 0 : i32
    return %c0_i32, %c0_i32_0 : i32, i32
  }
  func.func @transform_4(%arg0: i32) -> (i32, i32) {
    %c0_i32 = arith.constant 0 : i32
    %c0_i32_0 = arith.constant 0 : i32
    %c0_i32_1 = arith.constant 0 : i32
    return %c0_i32, %c0_i32_0 : i32, i32
  }
  func.func @transform_5(%arg0: i32) -> (i32, i32) {
    %c0_i32 = arith.constant 0 : i32
    %c0_i32_0 = arith.constant 0 : i32
    return %arg0, %c0_i32 : i32, i32
  }
}

module attributes {stable_mosaic.version = 11 : i64} {
  func.func @attention_concat_kernel(%arg0: i32, %arg1: memref<2x32xf32, #tpu.memory_space<vmem>>, %arg2: memref<2x8x32xf32, #tpu.memory_space<vmem>>, %arg3: memref<32x32xf32, #tpu.memory_space<vmem>>, %arg4: memref<32x32xf32, #tpu.memory_space<vmem>>, %arg5: memref<1x32xf32, #tpu.memory_space<vmem>>, %arg6: memref<2x8xf32, #tpu.memory_space<vmem>>) attributes {dimension_semantics = [#tpu.dimension_semantics<parallel>], iteration_bounds = array<i64: 1>, scalar_prefetch = 0 : i64, scratch_operands = 0 : i64, tpu.core_type = #tpu.core_type<tc>, window_params = [{transform_indices = @transform_0, window_bounds = array<i64: 2, 32>}, {transform_indices = @transform_1, window_bounds = array<i64: 2, 8, 32>}, {pipeline_mode = #tpu.pipeline_mode<synchronous>, transform_indices = @transform_2, window_bounds = array<i64: 32, 32>}, {pipeline_mode = #tpu.pipeline_mode<synchronous>, transform_indices = @transform_3, window_bounds = array<i64: 32, 32>}, {pipeline_mode = #tpu.pipeline_mode<synchronous>, transform_indices = @transform_4, window_bounds = array<i64: 1, 32>}, {transform_indices = @transform_5, window_bounds = array<i64: 2, 8>}]} {
    %c0 = arith.constant 0 : index
    %c0_0 = arith.constant 0 : index
    %0 = vector.load %arg1[%c0, %c0_0] : memref<2x32xf32, #tpu.memory_space<vmem>>, vector<2x32xf32>
    %c0_1 = arith.constant 0 : index
    %c0_2 = arith.constant 0 : index
    %1 = vector.load %arg3[%c0_1, %c0_2] : memref<32x32xf32, #tpu.memory_space<vmem>>, vector<32x32xf32>
    %c0_3 = arith.constant 0 : index
    %c0_4 = arith.constant 0 : index
    %2 = vector.load %arg4[%c0_3, %c0_4] : memref<32x32xf32, #tpu.memory_space<vmem>>, vector<32x32xf32>
    %c0_5 = arith.constant 0 : index
    %c0_6 = arith.constant 0 : index
    %3 = vector.load %arg5[%c0_5, %c0_6] : memref<1x32xf32, #tpu.memory_space<vmem>>, vector<1x32xf32>
    %cst = arith.constant dense<0.000000e+00> : vector<2x32xf32>
    %4 = tpu.matmul %0, %1, %cst {dimension_numbers = #tpu.dot_dimension_numbers<[1], [1], [0], [0], [0, 0, 1, 0], [], []>} : vector<2x32xf32>, vector<32x32xf32>, vector<2x32xf32> -> vector<2x32xf32>
    %c0_7 = arith.constant 0 : index
    %c0_8 = arith.constant 0 : index
    %c0_9 = arith.constant 0 : index
    %5 = vector.load %arg2[%c0_7, %c0_8, %c0_9] : memref<2x8x32xf32, #tpu.memory_space<vmem>>, vector<2x8x32xf32>
    %6 = vector.shape_cast %5 : vector<2x8x32xf32> to vector<16x32xf32>
    %cst_10 = arith.constant dense<0.000000e+00> : vector<16x32xf32>
    %7 = tpu.matmul %6, %2, %cst_10 {dimension_numbers = #tpu.dot_dimension_numbers<[1], [1], [0], [0], [0, 0, 1, 0], [], []>} : vector<16x32xf32>, vector<32x32xf32>, vector<16x32xf32> -> vector<16x32xf32>
    %8 = vector.shape_cast %7 : vector<16x32xf32> to vector<2x8x32xf32>
    %9 = vector.shape_cast %4 : vector<2x32xf32> to vector<2x1x32xf32>
    %10 = vector.broadcast %9 : vector<2x1x32xf32> to vector<2x8x32xf32>
    %11 = arith.addf %8, %10 : vector<2x8x32xf32>
    %12 = math.tanh %11 : vector<2x8x32xf32>
    %13 = vector.shape_cast %3 : vector<1x32xf32> to vector<1x1x32xf32>
    %14 = vector.broadcast %13 : vector<1x1x32xf32> to vector<2x8x32xf32>
    %15 = arith.mulf %12, %14 : vector<2x8x32xf32>
    %cst_11 = arith.constant dense<0.000000e+00> : vector<2x8xf32>
    %16 = vector.multi_reduction <add>, %15, %cst_11 [2] : vector<2x8x32xf32> to vector<2x8xf32>
    %cst_12 = arith.constant dense<0xFF800000> : vector<2xf32>
    %17 = vector.multi_reduction <maximumf>, %16, %cst_12 [1] : vector<2x8xf32> to vector<2xf32>
    %18 = vector.shape_cast %17 : vector<2xf32> to vector<2x1xf32>
    %19 = vector.broadcast %18 : vector<2x1xf32> to vector<2x8xf32>
    %20 = arith.subf %16, %19 : vector<2x8xf32>
    %21 = math.exp %20 : vector<2x8xf32>
    %cst_13 = arith.constant dense<0.000000e+00> : vector<2xf32>
    %22 = vector.multi_reduction <add>, %21, %cst_13 [1] : vector<2x8xf32> to vector<2xf32>
    %23 = vector.shape_cast %22 : vector<2xf32> to vector<2x1xf32>
    %24 = vector.broadcast %23 : vector<2x1xf32> to vector<2x8xf32>
    %25 = arith.divf %21, %24 : vector<2x8xf32>
    %c0_14 = arith.constant 0 : index
    %c0_15 = arith.constant 0 : index
    %26 = vector.load %arg6[%c0_14, %c0_15] : memref<2x8xf32, #tpu.memory_space<vmem>>, vector<2x8xf32>
    tpu.vector_store %arg6[%c0_14, %c0_15], %25 {strides = array<i32>} : memref<2x8xf32, #tpu.memory_space<vmem>>, vector<2x8xf32>,
    return
  }
  func.func @transform_0(%arg0: i32) -> (i32, i32) {
    %c0_i32 = arith.constant 0 : i32
    %c0_i32_0 = arith.constant 0 : i32
    return %arg0, %c0_i32 : i32, i32
  }
  func.func @transform_1(%arg0: i32) -> (i32, i32, i32) {
    %c0_i32 = arith.constant 0 : i32
    %c0_i32_0 = arith.constant 0 : i32
    %c0_i32_1 = arith.constant 0 : i32
    return %arg0, %c0_i32, %c0_i32_0 : i32, i32, i32
  }
  func.func @transform_2(%arg0: i32) -> (i32, i32) {
    %c0_i32 = arith.constant 0 : i32
    %c0_i32_0 = arith.constant 0 : i32
    %c0_i32_1 = arith.constant 0 : i32
    return %c0_i32, %c0_i32_0 : i32, i32
  }
  func.func @transform_3(%arg0: i32) -> (i32, i32) {
    %c0_i32 = arith.constant 0 : i32
    %c0_i32_0 = arith.constant 0 : i32
    %c0_i32_1 = arith.constant 0 : i32
    return %c0_i32, %c0_i32_0 : i32, i32
  }
  func.func @transform_4(%arg0: i32) -> (i32, i32) {
    %c0_i32 = arith.constant 0 : i32
    %c0_i32_0 = arith.constant 0 : i32
    %c0_i32_1 = arith.constant 0 : i32
    return %c0_i32, %c0_i32_0 : i32, i32
  }
  func.func @transform_5(%arg0: i32) -> (i32, i32) {
    %c0_i32 = arith.constant 0 : i32
    %c0_i32_0 = arith.constant 0 : i32
    return %arg0, %c0_i32 : i32, i32
  }
}

</mosaic_0001>

<bundles_post_ra>
// kernel: tpu_custom_call.1
= control target key start
LH: loop header
LB: loop body
LE: loop exit
PB: predicated region body
PF: predicated region fallthrough
CT: control target
= control target key end

     0   :  { %10 = vsyncpa [#allocation3], 0  ;;  %s782_s0 = inlined_call_operand.hbm [shape: f32[2,32], index: 0, kind: input, shape index: {}]   ;;  %s783_s1 = inlined_call_operand.hbm [shape: f32[2,8,32], index: 1, kind: input, shape index: {}]   ;;  %s784_s2 = inlined_call_operand.hbm [shape: f32[32,32], index: 2, kind: input, shape index: {}]   ;;  %s785_s3 = inlined_call_operand.hbm [shape: f32[32,32], index: 3, kind: input, shape index: {}]   ;;  %s786_s4 = inlined_call_operand.vmem [shape: f32[1,32], index: 4, kind: input, shape index: {}]   ;;  %s787_s5 = inlined_call_operand.hbm [shape: f32[2,8], index: 5, kind: output, shape index: {}]  }
   0x1   :  { %11 = vsyncpa [#allocation6], 0 }
   0x2   :  { %12 = vsyncpa [#allocation9], 0 }
   0x3   :  { %13 = vsyncpa [#allocation4], 0  ;;  %s633_s18 = smov [#allocation5]   ;;  %s515_s22 = scalar_lea.hbm %s783_s1, 256 }
   0x4   :  { %s29_s19 = sshll.u32 %s633_s18, 4  ;;  %p516_p0 = scmp.ne.s32.totalorder %s783_s1, %s515_s22  ;;  %s30_s19 = int_to_ptr.vmem [resolvable:$true] %s29_s19 }
   0x5   :  { %p519_p1 = scmp.lt.u32.totalorder %s515_s22, %s783_s1 }
   0x7   :  { %p521_p2 = pnand %p519_p1, %p516_p0 }
   0x9   :  { %524 = shalt.err (!%p521_p2)
}
   0xa   :  { %s525_s27 = scalar_lea.vmem %s30_s19, 256  ;;  %p530_p4 = scmp.lt.s32.totalorder %s30_s19, %s30_s19 }
   0xb   :  { %p526_p3 = scmp.ne.s32.totalorder %s30_s19, %s525_s27  ;;  %p531_p5 = scmp.lt.s32.totalorder %s525_s27, %s525_s27 }
   0xd   :  { %p532_p6 = por %p531_p5, %p530_p4 }
   0xf   :  { %p533_p7 = pnand %p532_p6, %p526_p3 }
  0x11   :  { %536 = shalt.err (!%p533_p7)
}
  0x12   :  { %s634_s28 = smov 128   ;;  %s635_s29 = smov 8  }
  0x13   :  { %35 = dma.hbm_to_vmem [thread:$0]  %s783_s1, 256, %s30_s19, [#allocation6], %s634_s28, %s634_s28, %s635_s29  }
  0x14   :  { %s636_s7 = smov [#allocation2]   ;;  %s637_s9 = smov [#allocation7]  }
  0x15   :  { %s20_s8 = sshll.u32 %s636_s7, 4  ;;  %s41_s10 = sshll.u32 %s637_s9, 4  ;;  %s21_s8 = int_to_ptr.vmem [resolvable:$true] %s20_s8  ;;  %s42_s10 = int_to_ptr.vmem [resolvable:$true] %s41_s10 }
  0x16   :  { %s537_s13 = scalar_lea.hbm %s782_s0, 32 }
  0x17   :  { %p538_p8 = scmp.ne.s32.totalorder %s782_s0, %s537_s13  ;;  %p541_p9 = scmp.lt.u32.totalorder %s537_s13, %s782_s0 }
  0x19   :  { %p543_p10 = pnand %p541_p9, %p538_p8 }
  0x1b   :  { %546 = shalt.err (!%p543_p10)
}
  0x1c   :  { %s547_s1 = scalar_lea.vmem %s21_s8, 32  ;;  %p552_p12 = scmp.lt.s32.totalorder %s21_s8, %s21_s8 }
  0x1d   :  { %p548_p11 = scmp.ne.s32.totalorder %s21_s8, %s547_s1  ;;  %p553_p13 = scmp.lt.s32.totalorder %s547_s1, %s547_s1 }
  0x1f   :  { %p554_p0 = por %p553_p13, %p552_p12 }
  0x21   :  { %p555_p1 = pnand %p554_p0, %p548_p11 }
  0x23   :  { %558 = shalt.err (!%p555_p1)
}
  0x24   :  { %23 = dma.hbm_to_vmem [thread:$0]  %s782_s0, 32, %s21_s8, [#allocation3]  }
  0x25   :  { %s559_s22 = scalar_lea.hbm %s784_s2, 512 }
  0x26   :  { %p560_p2 = scmp.ne.s32.totalorder %s784_s2, %s559_s22  ;;  %p563_p3 = scmp.lt.u32.totalorder %s559_s22, %s784_s2 }
  0x28   :  { %p565_p4 = pnand %p563_p3, %p560_p2 }
  0x2a   :  { %568 = shalt.err (!%p565_p4)
}
  0x2b   :  { %s569_s27 = scalar_lea.vmem %s42_s10, 512  ;;  %p574_p6 = scmp.lt.s32.totalorder %s42_s10, %s42_s10 }
  0x2c   :  { %p570_p5 = scmp.ne.s32.totalorder %s42_s10, %s569_s27  ;;  %p575_p7 = scmp.lt.s32.totalorder %s569_s27, %s569_s27 }
  0x2e   :  { %p576_p8 = por %p575_p7, %p574_p6 }
  0x30   :  { %p577_p9 = pnand %p576_p8, %p570_p5 }
  0x32   :  { %580 = shalt.err (!%p577_p9)
}
  0x33   :  { %47 = dma.hbm_to_vmem [thread:$0]  %s784_s2, 512, %s42_s10, [#allocation6], %s634_s28, %s634_s28, %s635_s29  }
  0x34   :  { %s638_s6 = smov [#allocation8]   ;;  %s581_s11 = scalar_lea.hbm %s785_s3, 512 }
  0x35   :  { %s53_s7 = sshll.u32 %s638_s6, 4  ;;  %p582_p10 = scmp.ne.s32.totalorder %s785_s3, %s581_s11  ;;  %s54_s7 = int_to_ptr.vmem [resolvable:$true] %s53_s7 }
  0x36   :  { %p585_p11 = scmp.lt.u32.totalorder %s581_s11, %s785_s3 }
  0x38   :  { %p587_p12 = pnand %p585_p11, %p582_p10 }
  0x3a   :  { %590 = shalt.err (!%p587_p12)
}
  0x3b   :  { %s591_s16 = scalar_lea.vmem %s54_s7, 512  ;;  %p596_p0 = scmp.lt.s32.totalorder %s54_s7, %s54_s7 }
  0x3c   :  { %p592_p13 = scmp.ne.s32.totalorder %s54_s7, %s591_s16  ;;  %p597_p1 = scmp.lt.s32.totalorder %s591_s16, %s591_s16 }
  0x3e   :  { %p598_p2 = por %p597_p1, %p596_p0 }
  0x40   :  { %p599_p3 = pnand %p598_p2, %p592_p13 }
  0x42   :  { %602 = shalt.err (!%p599_p3)
}
  0x43   :  { %59 = dma.hbm_to_vmem [thread:$0]  %s785_s3, 512, %s54_s7, [#allocation9], %s634_s28, %s634_s28, %s635_s29  }
  0x44   :  { %625 = dma.done.wait [#allocation3], 32  }
  0x45   :  { %626 = vsyncadd [#allocation3], 4294967264 }
  0x46   :  { %627 = dma.done.wait [#allocation6], 768  }
  0x47   :  { %628 = vsyncadd [#allocation6], 4294966528 }
  0x48   :  { %629 = dma.done.wait [#allocation9], 512  }
  0x49   :  { %630 = vsyncadd [#allocation9], 4294966784  ;;  %v639_v0 = vmov 0.0|0.0   ;;  %vm640_vm0 = vmmov 0   ;;  %v641_v1 = vmov 0.0   ;;  %vm84_vm1 = vcmask 261120  }
  0x4a   :  { %469 = vmatprep.subr.bf16.mxu0 %v639_v0  ;;  %455 = vmatprep.mubr.msk.f32.mxu0 %vm640_vm0, %v641_v1  ;;  %vm734_vm2 = vmpackc.low %vm84_vm1, %vm84_vm1  ;;  %v75_v3 = vld [vmem:[#allocation7] sm:$0xff]  ;;  %v76_v4 = vld [vmem:[#allocation7 + $0x8] sm:$0xff]  ;;  %v642_v18 = vmov 1966171168   ;;  %v269_v20 = vlaneseq  ;;  %vm328_vm3 = vcmask 1041409   ;;  %vm331_vm4 = vcmask 58368  }
  0x4b   :  { %v79_v5 = vld [vmem:[#allocation8] sm:$0xff]  ;;  %v470_v6 = vpack.c.bf16 %v76_v4, %v75_v3  ;;  %v80_v7 = vld [vmem:[#allocation8 + $0x8] sm:$0xff]  ;;  %v81_v9 = vld [vmem:[#allocation8 + $0x10] sm:$0xff]  ;;  %v267_v19 = vunpack.c.l.s4 %v642_v18  ;;  %v643_v52 = vmov 0  }
  0x4c   :  { %v477_v8 = vpack.c.bf16 %v80_v7, %v79_v5  ;;  %v82_v10 = vld [vmem:[#allocation8 + $0x18] sm:$0xff]  ;;  %v170_v12 = vld [vmem:[#allocation5] sm:$0xff]  ;;  %v74_v16 = vld [vmem:[#allocation2] sm:$0x3]  ;;  %v753_v22 = vshrl.u32 %v269_v20, 7  ;;  %v319_v44 = vand.u32 127, %v269_v20  ;;  %502 = vset.pattern.permute.xlu0 %v643_v52  ;;  %501 = vset.pattern.permute.xlu1 %v643_v52 }
  0x4d   :  { %472 = vmatpush3.bf16.xpose.msk.msra.mxu0 %vm734_vm2, %v470_v6  ;;  %v483_v11 = vpack.c.bf16 %v82_v10, %v81_v9  ;;  %v77_v13 = vld [vmem:[#allocation7 + $0x10] sm:$0xff]  ;;  %v78_v14 = vld [vmem:[#allocation7 + $0x18] sm:$0xff]  ;;  %466 = vmatprep.mubr.msk.f32.mxu1 %vm84_vm1, %v170_v12  ;;  %v268_v21 = vunpack.c.0.s8 %v267_v19  ;;  %v435_v37 = vld [vmem:[%s786_s4] ss:$0 sm:$0xff]  ;;  %s644_s4 = smov [#allocation10]  }
  0x4e   :  { %479 = vmatprep.subr.msk.bf16.mxu1 %vm734_vm2, %v477_v8  ;;  %473 = vmatprep.subr.bf16.mxu0 %v639_v0  ;;  %v474_v15 = vpack.c.bf16 %v78_v14, %v77_v13  ;;  %v171_v17 = vld [vmem:[#allocation5 + $0x8] sm:$0xff]  ;;  %v290_v27 = vsub.s32 0, %v753_v22  ;;  %v322_v46 = vsub.s32 %v319_v44, %v753_v22  ;;  %v342_v53 = vsub.s32 1, %v753_v22  ;;  %s413_s29 = sshll.u32 %s644_s4, 4  ;;  %s414_s29 = int_to_ptr.vmem [resolvable:$true] %s413_s29 }
  0x4f   :  { %482 = vmatpush3.bf16.xpose.msk.msra.mxu1 %vm734_vm2, %v477_v8  ;;  %v271_v23 = vsub.s32 %v268_v21, %v753_v22  ;;  %s603_s17 = scalar_lea.vmem %s414_s29, 32  ;;  %p608_p5 = scmp.lt.s32.totalorder %s414_s29, %s414_s29 }
  0x50   :  { %485 = vmatprep.subr.msk.bf16.mxu1 %vm734_vm2, %v483_v11  ;;  %p604_p4 = scmp.ne.s32.totalorder %s414_s29, %s603_s17  ;;  %p609_p6 = scmp.lt.s32.totalorder %s603_s17, %s603_s17 }
  0x52   :  { %p610_p7 = por %p609_p6, %p608_p5 }
  0x54   :  { %p611_p8 = pnand %p610_p7, %p604_p4 }
  0x55   :  { %476 = vmatpush3.bf16.xpose.msk.msra.mxu0 %vm734_vm2, %v474_v15 }
  0x57   :  { %488 = vmatpush3.bf16.xpose.msk.msra.mxu1 %vm734_vm2, %v483_v11 }
  0x5c   :  { %456 = vmatmul.mubr.msk.f32.vlgmr.msra.gmra.mrb[0].mxu0 %vm84_vm1, %v74_v16 }
  0x5e   :  { %467 = vmatmul.mubr.msk.f32.vlgmr.msra.gmra.mrb[0].mxu1 %vm84_vm1, %v171_v17 }
 0x12f   :  { %v166_v24 = vpop.f32.mrb[0].mxu0 }
 0x130   :  { %v272_v25 = vrot.slane %v166_v24, %v271_v23  ;;  %v457_v26 = vpop.f32.mrb[1].mxu0 }
 0x131   :  { %v468_v28 = vpop.f32.mrb[0].mxu1 }
 0x132   :  { %v273_v29 = vcombine.high %v272_v25, %v272_v25  ;;  %v280_v30 = vrot.slane %v272_v25, %v271_v23  ;;  %v256_v31 = vpop.f32.mrb[1].mxu1 }
 0x134   :  { %v287_v32 = vrot.slane %v273_v29, %v271_v23  ;;  %v291_v33 = vrot.slane %v280_v30, %v290_v27 }
 0x136   :  { %v295_v34 = vrot.slane %v287_v32, %v290_v27  ;;  %v298_v35 = vadd.f32 %v291_v33, %v256_v31 }
 0x138   :  { %v299_v36 = vadd.f32 %v468_v28, %v295_v34  ;;  %503 = vtanh.f32 %v298_v35 }
 0x13a   :  { %505 = vtanh.f32 %v299_v36 }
 0x142   :  { %v504_v38 = vpop.eup %503 }
 0x143   :  { %v308_v39 = vmul.f32 %v504_v38, %v435_v37 }
 0x144   :  { %v506_v40 = vpop.eup %505 }
 0x145   :  { %v310_v41 = vsel %vm84_vm1, %v308_v39, 0.0  ;;  %v309_v42 = vmul.f32 %v506_v40, %v435_v37 }
 0x146   :  { %311 = vadd.xlane.f32.xlu0 %v310_v41 }
 0x147   :  { %v313_v43 = vsel %vm84_vm1, %v309_v42, 0.0 }
 0x14a   :  { %314 = vadd.xlane.f32.xlu0 %v313_v43 }
 0x1d3   :  { %v312_v45 = vpop.xlane.xlu0 %311 }
 0x1d4   :  { %v323_v48 = vrot.slane %v312_v45, %v322_v46 }
 0x1d7   :  { %v315_v47 = vpop.xlane.xlu0 %314 }
 0x1d8   :  { %v327_v49 = vrot.slane %v315_v47, %v322_v46 }
 0x1da   :  { %v329_v50 = vsel %vm328_vm3, %v327_v49, %v323_v48 }
 0x1db   :  { %v332_v51 = vsel %vm331_vm4, %v329_v50, -inf }
 0x1dc   :  { %333 = vmax.xlane.f32.xlu1 %v332_v51 }
 0x269   :  { %v334_v54 = vpop.xlane.xlu1 %333 }
 0x26a   :  { %v339_v55 = vrot.slane %v334_v54, %v290_v27  ;;  %v343_v56 = vrot.slane %v334_v54, %v342_v53 }
 0x26c   :  { %v346_v57 = vsub.f32 %v312_v45, %v339_v55  ;;  %v347_v58 = vsub.f32 %v315_v47, %v343_v56 }
 0x26e   :  { %v348_v59 = vmul.f32 1.442695, %v346_v57  ;;  %v350_v60 = vmul.f32 1.442695, %v347_v58 }
 0x270   :  { %507 = vpow2.f32 %v348_v59 }
 0x271   :  { %509 = vpow2.f32 %v350_v60 }
 0x27a   :  { %v508_v61 = vpop.eup %507 }
 0x27b   :  { %v510_v62 = vpop.eup %509  ;;  %355 = vperm.xlu1 %501, %v508_v61  }
 0x27c   :  { %358 = vperm.xlu0 %502, %v510_v62  }
 0x2fa   :  { %v356_v63 = vpop.permute.xlu1 %355 }
 0x2fb   :  { %v359_v0 = vpop.permute.xlu0 %358  ;;  %v363_v1 = vrot.slane %v356_v63, %v322_v46 }
 0x2fc   :  { %v367_v2 = vrot.slane %v359_v0, %v322_v46 }
 0x2fe   :  { %v368_v3 = vsel %vm328_vm3, %v367_v2, %v363_v1 }
 0x2ff   :  { %v370_v4 = vsel %vm331_vm4, %v368_v3, 0.0 }
 0x300   :  { %371 = vadd.xlane.f32.xlu1 %v370_v4 }
 0x38d   :  { %v372_v5 = vpop.xlane.xlu1 %371 }
 0x38e   :  { %v377_v6 = vrot.slane %v372_v5, %v290_v27  ;;  %v381_v7 = vrot.slane %v372_v5, %v342_v53 }
 0x390   :  { %511 = vrcp.f32 %v377_v6 }
 0x391   :  { %513 = vrcp.f32 %v381_v7 }
 0x39a   :  { %v512_v8 = vpop.eup %511 }
 0x39b   :  { %v385_v9 = vmul.f32 %v512_v8, %v508_v61  ;;  %v514_v10 = vpop.eup %513 }
 0x39c   :  { %v387_v11 = vmul.f32 %v514_v10, %v510_v62 }
 0x39d   :  { %391 = vperm.xlu0 %502, %v385_v9  }
 0x3a1   :  { %394 = vperm.xlu0 %502, %v387_v11  }
 0x41c   :  { %v392_v12 = vpop.permute.xlu0 %391 }
 0x41d   :  { %v399_v14 = vrot.slane %v392_v12, %v322_v46 }
 0x420   :  { %v395_v13 = vpop.permute.xlu0 %394 }
 0x421   :  { %v403_v15 = vrot.slane %v395_v13, %v322_v46 }
 0x423   :  { %v404_v16 = vsel %vm328_vm3, %v403_v15, %v399_v14 }
 0x424   :  { %406 = vst.msk [vmem:[#allocation10] sm:$0x3] %vm331_vm4, %v404_v16 }
 0x425   :  { %614 = shalt.err (!%p611_p8)
}
 0x426   :  { %s615_s19 = scalar_lea.hbm %s787_s5, 32 }
 0x427   :  { %p616_p9 = scmp.ne.s32.totalorder %s787_s5, %s615_s19  ;;  %p619_p10 = scmp.lt.u32.totalorder %s615_s19, %s787_s5 }
 0x429   :  { %p621_p11 = pnand %p619_p10, %p616_p9 }
 0x42b   :  { %624 = shalt.err (!%p621_p11)
}
 0x42c   :  { %416 = dma.vmem_to_hbm [thread:$0]  %s414_s29, 32, %s787_s5, [#allocation4]  }
 0x42d   :  { %631 = dma.done.wait [#allocation4], 32  }
 0x42e   :  { %632 = vsyncadd [#allocation4], 4294967264 }
 0x42f   :  { %420 = vsyncpa [#allocation3], 1 }
 0x430   :  { %421 = vsyncpa [#allocation6], 1 }
 0x431   :  { %422 = vsyncpa [#allocation9], 1 }
 0x432   :  { %423 = vsyncpa [#allocation4], 1 }

// kernel: tpu_custom_call.1
= control target key start
LH: loop header
LB: loop body
LE: loop exit
PB: predicated region body
PF: predicated region fallthrough
CT: control target
= control target key end

     0   :  { %10 = vsyncpa [#allocation3], 0  ;;  %s782_s0 = inlined_call_operand.hbm [shape: f32[2,32], index: 0, kind: input, shape index: {}]   ;;  %s783_s1 = inlined_call_operand.hbm [shape: f32[2,8,32], index: 1, kind: input, shape index: {}]   ;;  %s784_s2 = inlined_call_operand.hbm [shape: f32[32,32], index: 2, kind: input, shape index: {}]   ;;  %s785_s3 = inlined_call_operand.hbm [shape: f32[32,32], index: 3, kind: input, shape index: {}]   ;;  %s786_s4 = inlined_call_operand.vmem [shape: f32[1,32], index: 4, kind: input, shape index: {}]   ;;  %s787_s5 = inlined_call_operand.hbm [shape: f32[2,8], index: 5, kind: output, shape index: {}]  }
   0x1   :  { %11 = vsyncpa [#allocation6], 0 }
   0x2   :  { %12 = vsyncpa [#allocation9], 0 }
   0x3   :  { %13 = vsyncpa [#allocation4], 0  ;;  %s633_s18 = smov [#allocation5]   ;;  %s515_s22 = scalar_lea.hbm %s783_s1, 256 }
   0x4   :  { %s29_s19 = sshll.u32 %s633_s18, 4  ;;  %p516_p0 = scmp.ne.s32.totalorder %s783_s1, %s515_s22  ;;  %s30_s19 = int_to_ptr.vmem [resolvable:$true] %s29_s19 }
   0x5   :  { %p519_p1 = scmp.lt.u32.totalorder %s515_s22, %s783_s1 }
   0x7   :  { %p521_p2 = pnand %p519_p1, %p516_p0 }
   0x9   :  { %524 = shalt.err (!%p521_p2)
}
   0xa   :  { %s525_s27 = scalar_lea.vmem %s30_s19, 256  ;;  %p530_p4 = scmp.lt.s32.totalorder %s30_s19, %s30_s19 }
   0xb   :  { %p526_p3 = scmp.ne.s32.totalorder %s30_s19, %s525_s27  ;;  %p531_p5 = scmp.lt.s32.totalorder %s525_s27, %s525_s27 }
   0xd   :  { %p532_p6 = por %p531_p5, %p530_p4 }
   0xf   :  { %p533_p7 = pnand %p532_p6, %p526_p3 }
  0x11   :  { %536 = shalt.err (!%p533_p7)
}
  0x12   :  { %s634_s28 = smov 128   ;;  %s635_s29 = smov 8  }
  0x13   :  { %35 = dma.hbm_to_vmem [thread:$0]  %s783_s1, 256, %s30_s19, [#allocation6], %s634_s28, %s634_s28, %s635_s29  }
  0x14   :  { %s636_s7 = smov [#allocation2]   ;;  %s637_s9 = smov [#allocation7]  }
  0x15   :  { %s20_s8 = sshll.u32 %s636_s7, 4  ;;  %s41_s10 = sshll.u32 %s637_s9, 4  ;;  %s21_s8 = int_to_ptr.vmem [resolvable:$true] %s20_s8  ;;  %s42_s10 = int_to_ptr.vmem [resolvable:$true] %s41_s10 }
  0x16   :  { %s537_s13 = scalar_lea.hbm %s782_s0, 32 }
  0x17   :  { %p538_p8 = scmp.ne.s32.totalorder %s782_s0, %s537_s13  ;;  %p541_p9 = scmp.lt.u32.totalorder %s537_s13, %s782_s0 }
  0x19   :  { %p543_p10 = pnand %p541_p9, %p538_p8 }
  0x1b   :  { %546 = shalt.err (!%p543_p10)
}
  0x1c   :  { %s547_s1 = scalar_lea.vmem %s21_s8, 32  ;;  %p552_p12 = scmp.lt.s32.totalorder %s21_s8, %s21_s8 }
  0x1d   :  { %p548_p11 = scmp.ne.s32.totalorder %s21_s8, %s547_s1  ;;  %p553_p13 = scmp.lt.s32.totalorder %s547_s1, %s547_s1 }
  0x1f   :  { %p554_p0 = por %p553_p13, %p552_p12 }
  0x21   :  { %p555_p1 = pnand %p554_p0, %p548_p11 }
  0x23   :  { %558 = shalt.err (!%p555_p1)
}
  0x24   :  { %23 = dma.hbm_to_vmem [thread:$0]  %s782_s0, 32, %s21_s8, [#allocation3]  }
  0x25   :  { %s559_s22 = scalar_lea.hbm %s784_s2, 512 }
  0x26   :  { %p560_p2 = scmp.ne.s32.totalorder %s784_s2, %s559_s22  ;;  %p563_p3 = scmp.lt.u32.totalorder %s559_s22, %s784_s2 }
  0x28   :  { %p565_p4 = pnand %p563_p3, %p560_p2 }
  0x2a   :  { %568 = shalt.err (!%p565_p4)
}
  0x2b   :  { %s569_s27 = scalar_lea.vmem %s42_s10, 512  ;;  %p574_p6 = scmp.lt.s32.totalorder %s42_s10, %s42_s10 }
  0x2c   :  { %p570_p5 = scmp.ne.s32.totalorder %s42_s10, %s569_s27  ;;  %p575_p7 = scmp.lt.s32.totalorder %s569_s27, %s569_s27 }
  0x2e   :  { %p576_p8 = por %p575_p7, %p574_p6 }
  0x30   :  { %p577_p9 = pnand %p576_p8, %p570_p5 }
  0x32   :  { %580 = shalt.err (!%p577_p9)
}
  0x33   :  { %47 = dma.hbm_to_vmem [thread:$0]  %s784_s2, 512, %s42_s10, [#allocation6], %s634_s28, %s634_s28, %s635_s29  }
  0x34   :  { %s638_s6 = smov [#allocation8]   ;;  %s581_s11 = scalar_lea.hbm %s785_s3, 512 }
  0x35   :  { %s53_s7 = sshll.u32 %s638_s6, 4  ;;  %p582_p10 = scmp.ne.s32.totalorder %s785_s3, %s581_s11  ;;  %s54_s7 = int_to_ptr.vmem [resolvable:$true] %s53_s7 }
  0x36   :  { %p585_p11 = scmp.lt.u32.totalorder %s581_s11, %s785_s3 }
  0x38   :  { %p587_p12 = pnand %p585_p11, %p582_p10 }
  0x3a   :  { %590 = shalt.err (!%p587_p12)
}
  0x3b   :  { %s591_s16 = scalar_lea.vmem %s54_s7, 512  ;;  %p596_p0 = scmp.lt.s32.totalorder %s54_s7, %s54_s7 }
  0x3c   :  { %p592_p13 = scmp.ne.s32.totalorder %s54_s7, %s591_s16  ;;  %p597_p1 = scmp.lt.s32.totalorder %s591_s16, %s591_s16 }
  0x3e   :  { %p598_p2 = por %p597_p1, %p596_p0 }
  0x40   :  { %p599_p3 = pnand %p598_p2, %p592_p13 }
  0x42   :  { %602 = shalt.err (!%p599_p3)
}
  0x43   :  { %59 = dma.hbm_to_vmem [thread:$0]  %s785_s3, 512, %s54_s7, [#allocation9], %s634_s28, %s634_s28, %s635_s29  }
  0x44   :  { %625 = dma.done.wait [#allocation3], 32  }
  0x45   :  { %626 = vsyncadd [#allocation3], 4294967264 }
  0x46   :  { %627 = dma.done.wait [#allocation6], 768  }
  0x47   :  { %628 = vsyncadd [#allocation6], 4294966528 }
  0x48   :  { %629 = dma.done.wait [#allocation9], 512  }
  0x49   :  { %630 = vsyncadd [#allocation9], 4294966784  ;;  %v639_v0 = vmov 0.0|0.0   ;;  %vm640_vm0 = vmmov 0   ;;  %v641_v1 = vmov 0.0   ;;  %vm84_vm1 = vcmask 261120  }
  0x4a   :  { %469 = vmatprep.subr.bf16.mxu0 %v639_v0  ;;  %455 = vmatprep.mubr.msk.f32.mxu0 %vm640_vm0, %v641_v1  ;;  %vm734_vm2 = vmpackc.low %vm84_vm1, %vm84_vm1  ;;  %v75_v3 = vld [vmem:[#allocation7] sm:$0xff]  ;;  %v76_v4 = vld [vmem:[#allocation7 + $0x8] sm:$0xff]  ;;  %v642_v18 = vmov 1966171168   ;;  %v269_v20 = vlaneseq  ;;  %vm328_vm3 = vcmask 1041409   ;;  %vm331_vm4 = vcmask 58368  }
  0x4b   :  { %v79_v5 = vld [vmem:[#allocation8] sm:$0xff]  ;;  %v470_v6 = vpack.c.bf16 %v76_v4, %v75_v3  ;;  %v80_v7 = vld [vmem:[#allocation8 + $0x8] sm:$0xff]  ;;  %v81_v9 = vld [vmem:[#allocation8 + $0x10] sm:$0xff]  ;;  %v267_v19 = vunpack.c.l.s4 %v642_v18  ;;  %v643_v52 = vmov 0  }
  0x4c   :  { %v477_v8 = vpack.c.bf16 %v80_v7, %v79_v5  ;;  %v82_v10 = vld [vmem:[#allocation8 + $0x18] sm:$0xff]  ;;  %v170_v12 = vld [vmem:[#allocation5] sm:$0xff]  ;;  %v74_v16 = vld [vmem:[#allocation2] sm:$0x3]  ;;  %v753_v22 = vshrl.u32 %v269_v20, 7  ;;  %v319_v44 = vand.u32 127, %v269_v20  ;;  %502 = vset.pattern.permute.xlu0 %v643_v52  ;;  %501 = vset.pattern.permute.xlu1 %v643_v52 }
  0x4d   :  { %472 = vmatpush3.bf16.xpose.msk.msra.mxu0 %vm734_vm2, %v470_v6  ;;  %v483_v11 = vpack.c.bf16 %v82_v10, %v81_v9  ;;  %v77_v13 = vld [vmem:[#allocation7 + $0x10] sm:$0xff]  ;;  %v78_v14 = vld [vmem:[#allocation7 + $0x18] sm:$0xff]  ;;  %466 = vmatprep.mubr.msk.f32.mxu1 %vm84_vm1, %v170_v12  ;;  %v268_v21 = vunpack.c.0.s8 %v267_v19  ;;  %v435_v37 = vld [vmem:[%s786_s4] ss:$0 sm:$0xff]  ;;  %s644_s4 = smov [#allocation10]  }
  0x4e   :  { %479 = vmatprep.subr.msk.bf16.mxu1 %vm734_vm2, %v477_v8  ;;  %473 = vmatprep.subr.bf16.mxu0 %v639_v0  ;;  %v474_v15 = vpack.c.bf16 %v78_v14, %v77_v13  ;;  %v171_v17 = vld [vmem:[#allocation5 + $0x8] sm:$0xff]  ;;  %v290_v27 = vsub.s32 0, %v753_v22  ;;  %v322_v46 = vsub.s32 %v319_v44, %v753_v22  ;;  %v342_v53 = vsub.s32 1, %v753_v22  ;;  %s413_s29 = sshll.u32 %s644_s4, 4  ;;  %s414_s29 = int_to_ptr.vmem [resolvable:$true] %s413_s29 }
  0x4f   :  { %482 = vmatpush3.bf16.xpose.msk.msra.mxu1 %vm734_vm2, %v477_v8  ;;  %v271_v23 = vsub.s32 %v268_v21, %v753_v22  ;;  %s603_s17 = scalar_lea.vmem %s414_s29, 32  ;;  %p608_p5 = scmp.lt.s32.totalorder %s414_s29, %s414_s29 }
  0x50   :  { %485 = vmatprep.subr.msk.bf16.mxu1 %vm734_vm2, %v483_v11  ;;  %p604_p4 = scmp.ne.s32.totalorder %s414_s29, %s603_s17  ;;  %p609_p6 = scmp.lt.s32.totalorder %s603_s17, %s603_s17 }
  0x52   :  { %p610_p7 = por %p609_p6, %p608_p5 }
  0x54   :  { %p611_p8 = pnand %p610_p7, %p604_p4 }
  0x55   :  { %476 = vmatpush3.bf16.xpose.msk.msra.mxu0 %vm734_vm2, %v474_v15 }
  0x57   :  { %488 = vmatpush3.bf16.xpose.msk.msra.mxu1 %vm734_vm2, %v483_v11 }
  0x5c   :  { %456 = vmatmul.mubr.msk.f32.vlgmr.msra.gmra.mrb[0].mxu0 %vm84_vm1, %v74_v16 }
  0x5e   :  { %467 = vmatmul.mubr.msk.f32.vlgmr.msra.gmra.mrb[0].mxu1 %vm84_vm1, %v171_v17 }
 0x12f   :  { %v166_v24 = vpop.f32.mrb[0].mxu0 }
 0x130   :  { %v272_v25 = vrot.slane %v166_v24, %v271_v23  ;;  %v457_v26 = vpop.f32.mrb[1].mxu0 }
 0x131   :  { %v468_v28 = vpop.f32.mrb[0].mxu1 }
 0x132   :  { %v273_v29 = vcombine.high %v272_v25, %v272_v25  ;;  %v280_v30 = vrot.slane %v272_v25, %v271_v23  ;;  %v256_v31 = vpop.f32.mrb[1].mxu1 }
 0x134   :  { %v287_v32 = vrot.slane %v273_v29, %v271_v23  ;;  %v291_v33 = vrot.slane %v280_v30, %v290_v27 }
 0x136   :  { %v295_v34 = vrot.slane %v287_v32, %v290_v27  ;;  %v298_v35 = vadd.f32 %v291_v33, %v256_v31 }
 0x138   :  { %v299_v36 = vadd.f32 %v468_v28, %v295_v34  ;;  %503 = vtanh.f32 %v298_v35 }
 0x13a   :  { %505 = vtanh.f32 %v299_v36 }
 0x142   :  { %v504_v38 = vpop.eup %503 }
 0x143   :  { %v308_v39 = vmul.f32 %v504_v38, %v435_v37 }
 0x144   :  { %v506_v40 = vpop.eup %505 }
 0x145   :  { %v310_v41 = vsel %vm84_vm1, %v308_v39, 0.0  ;;  %v309_v42 = vmul.f32 %v506_v40, %v435_v37 }
 0x146   :  { %311 = vadd.xlane.f32.xlu0 %v310_v41 }
 0x147   :  { %v313_v43 = vsel %vm84_vm1, %v309_v42, 0.0 }
 0x14a   :  { %314 = vadd.xlane.f32.xlu0 %v313_v43 }
 0x1d3   :  { %v312_v45 = vpop.xlane.xlu0 %311 }
 0x1d4   :  { %v323_v48 = vrot.slane %v312_v45, %v322_v46 }
 0x1d7   :  { %v315_v47 = vpop.xlane.xlu0 %314 }
 0x1d8   :  { %v327_v49 = vrot.slane %v315_v47, %v322_v46 }
 0x1da   :  { %v329_v50 = vsel %vm328_vm3, %v327_v49, %v323_v48 }
 0x1db   :  { %v332_v51 = vsel %vm331_vm4, %v329_v50, -inf }
 0x1dc   :  { %333 = vmax.xlane.f32.xlu1 %v332_v51 }
 0x269   :  { %v334_v54 = vpop.xlane.xlu1 %333 }
 0x26a   :  { %v339_v55 = vrot.slane %v334_v54, %v290_v27  ;;  %v343_v56 = vrot.slane %v334_v54, %v342_v53 }
 0x26c   :  { %v346_v57 = vsub.f32 %v312_v45, %v339_v55  ;;  %v347_v58 = vsub.f32 %v315_v47, %v343_v56 }
 0x26e   :  { %v348_v59 = vmul.f32 1.442695, %v346_v57  ;;  %v350_v60 = vmul.f32 1.442695, %v347_v58 }
 0x270   :  { %507 = vpow2.f32 %v348_v59 }
 0x271   :  { %509 = vpow2.f32 %v350_v60 }
 0x27a   :  { %v508_v61 = vpop.eup %507 }
 0x27b   :  { %v510_v62 = vpop.eup %509  ;;  %355 = vperm.xlu1 %501, %v508_v61  }
 0x27c   :  { %358 = vperm.xlu0 %502, %v510_v62  }
 0x2fa   :  { %v356_v63 = vpop.permute.xlu1 %355 }
 0x2fb   :  { %v359_v0 = vpop.permute.xlu0 %358  ;;  %v363_v1 = vrot.slane %v356_v63, %v322_v46 }
 0x2fc   :  { %v367_v2 = vrot.slane %v359_v0, %v322_v46 }
 0x2fe   :  { %v368_v3 = vsel %vm328_vm3, %v367_v2, %v363_v1 }
 0x2ff   :  { %v370_v4 = vsel %vm331_vm4, %v368_v3, 0.0 }
 0x300   :  { %371 = vadd.xlane.f32.xlu1 %v370_v4 }
 0x38d   :  { %v372_v5 = vpop.xlane.xlu1 %371 }
 0x38e   :  { %v377_v6 = vrot.slane %v372_v5, %v290_v27  ;;  %v381_v7 = vrot.slane %v372_v5, %v342_v53 }
 0x390   :  { %511 = vrcp.f32 %v377_v6 }
 0x391   :  { %513 = vrcp.f32 %v381_v7 }
 0x39a   :  { %v512_v8 = vpop.eup %511 }
 0x39b   :  { %v385_v9 = vmul.f32 %v512_v8, %v508_v61  ;;  %v514_v10 = vpop.eup %513 }
 0x39c   :  { %v387_v11 = vmul.f32 %v514_v10, %v510_v62 }
 0x39d   :  { %391 = vperm.xlu0 %502, %v385_v9  }
 0x3a1   :  { %394 = vperm.xlu0 %502, %v387_v11  }
 0x41c   :  { %v392_v12 = vpop.permute.xlu0 %391 }
 0x41d   :  { %v399_v14 = vrot.slane %v392_v12, %v322_v46 }
 0x420   :  { %v395_v13 = vpop.permute.xlu0 %394 }
 0x421   :  { %v403_v15 = vrot.slane %v395_v13, %v322_v46 }
 0x423   :  { %v404_v16 = vsel %vm328_vm3, %v403_v15, %v399_v14 }
 0x424   :  { %406 = vst.msk [vmem:[#allocation10] sm:$0x3] %vm331_vm4, %v404_v16 }
 0x425   :  { %614 = shalt.err (!%p611_p8)
}
 0x426   :  { %s615_s19 = scalar_lea.hbm %s787_s5, 32 }
 0x427   :  { %p616_p9 = scmp.ne.s32.totalorder %s787_s5, %s615_s19  ;;  %p619_p10 = scmp.lt.u32.totalorder %s615_s19, %s787_s5 }
 0x429   :  { %p621_p11 = pnand %p619_p10, %p616_p9 }
 0x42b   :  { %624 = shalt.err (!%p621_p11)
}
 0x42c   :  { %416 = dma.vmem_to_hbm [thread:$0]  %s414_s29, 32, %s787_s5, [#allocation4]  }
 0x42d   :  { %631 = dma.done.wait [#allocation4], 32  }
 0x42e   :  { %632 = vsyncadd [#allocation4], 4294967264 }
 0x42f   :  { %420 = vsyncpa [#allocation3], 1 }
 0x430   :  { %421 = vsyncpa [#allocation6], 1 }
 0x431   :  { %422 = vsyncpa [#allocation9], 1 }
 0x432   :  { %423 = vsyncpa [#allocation4], 1 }

</bundles_post_ra>
